<compile_context>
chip_gen: v6e
topology: v6e:2x2x1
jax: 0.10.0
libtpu: 0.0.40
codegen_flags: <defaults>
</compile_context>

<pallas_src>
import jax
import jax.numpy as jnp
from jax import lax
from jax.experimental import pallas as pl
from jax.experimental.pallas import tpu as pltpu


def _make_edge_kernel(H, W):
    HW = H * W

    def kernel(x_ref, w_ref, o_ref):
        # x_ref: (1, C, H*W) lane-dense input (row-major (h, w) flattening)
        # w_ref: (C, 9*C) combined weights, column index (kh*3 + kw)*C + ci
        # o_ref: (1, C, H*W)
        C = x_ref.shape[1]
        dt = x_ref.dtype

        x2 = x_ref[0]                                      # (C, H*W)
        zpad = jnp.zeros((C, 2 * W), dt)
        # Zero frame of 2 rows above/below in flattened row-major space:
        # flat[c, r*W + w] == x[c, r-2, w] for 2 <= r < H+2, else 0.
        flat = jnp.concatenate([zpad, x2, zpad], axis=1)   # (C, (H+4)*W)

        # Boundary masks: fix the row-wrap seam of the left/right shifted taps.
        wpos = lax.broadcasted_iota(jnp.int32, (C, HW), 1) % W
        mask_l = (wpos != 0).astype(dt)                    # kw == 0 invalid at w == 0
        mask_r = (wpos != W - 1).astype(dt)                # kw == 2 invalid at w == W-1

        # Tap (kh, kw) at output q = h*W + w is flat[:, q + (kh+1)*W + kw - 1]
        # (masked at the W boundary for kw != 1). All 9 taps are contiguous
        # lane-offset slices of one flat slab -> no per-tap relayout.
        taps = []
        for kh in range(3):
            for kw in range(3):
                s = (kh + 1) * W + kw - 1
                t = flat[:, s:s + HW]                      # (C, H*W)
                if kw == 0:
                    t = t * mask_l
                elif kw == 2:
                    t = t * mask_r
                taps.append(t)
        cols = jnp.concatenate(taps, axis=0)               # (9*C, H*W)

        # Single fused MXU contraction over K = 9*C, fp32 accumulate.
        acc = lax.dot_general(w_ref[...], cols,
                              (((1,), (0,)), ((), ())),
                              preferred_element_type=jnp.float32)   # (C, H*W)
        o_ref[0] = acc.astype(o_ref.dtype)                 # lane-dense store

    return kernel


def edge_detection_layer(x, wx, wy):
    """x: (B, C, H, W); wx, wy: (C, C, 3, 3) conv weights (OIHW). Returns (B, C, H, W)."""
    B, C, H, W = x.shape
    HW = H * W

    # Lane-dense input: contiguous reshape is free in XLA (unlike the old jnp.pad pass).
    x_flat = x.reshape(B, C, HW)
    # convx + convy fused by linearity; (O, I, kh, kw) -> column (kh*3+kw)*C + i.
    w9 = (wx + wy).astype(x.dtype).transpose(0, 2, 3, 1).reshape(C, 9 * C)

    itemsize = jnp.dtype(x.dtype).itemsize
    cost = pl.CostEstimate(
        flops=2 * B * C * 9 * C * HW,
        transcendentals=0,
        bytes_accessed=(2 * B * C * HW + C * 9 * C) * itemsize,
    )

    # TODO(synk): for large C/H/W add an H-band grid axis (halo handled by the same
    # flat-slab shifts) so the fp32 accumulator / double-buffered tiles fit vregs and
    # v7x's 64 MiB VMEM; the whole-image-per-step block below is sized for small shapes.
    out_flat = pl.pallas_call(
        _make_edge_kernel(H, W),
        out_shape=jax.ShapeDtypeStruct((B, C, HW), x.dtype),
        grid_spec=pltpu.PrefetchScalarGridSpec(
            num_scalar_prefetch=0,
            grid=(B,),
            in_specs=[
                pl.BlockSpec((1, C, HW), lambda b: (b, 0, 0)),
                pl.BlockSpec((C, 9 * C), lambda b: (0, 0)),
            ],
            out_specs=pl.BlockSpec((1, C, HW), lambda b: (b, 0, 0)),
        ),
        compiler_params=pltpu.CompilerParams(
            dimension_semantics=("parallel",),
            vmem_limit_bytes=32 * 1024 * 1024,
        ),
        cost_estimate=cost,
    )(x_flat, w9)

    return out_flat.reshape(B, C, H, W)


def make_weights(input_channel, dtype=jnp.float32):
    # Deterministic weights exactly as in EdgeDetectionLayer.__init__
    kx = jnp.array([[-1.0, 0.0, 1.0]] * 3, dtype=dtype)                  # (3,3)
    ky = jnp.array([[1.0, 1.0, 1.0],
                    [0.0, 0.0, 0.0],
                    [-1.0, -1.0, -1.0]], dtype=dtype)                    # (3,3)
    wx = jnp.broadcast_to(kx, (input_channel, input_channel, 3, 3))
    wy = jnp.broadcast_to(ky, (input_channel, input_channel, 3, 3))
    return wx, wy


def _reference(x, wx, wy):
    dn = lax.conv_dimension_numbers(x.shape, wx.shape, ("NCHW", "OIHW", "NCHW"))
    cx = lax.conv_general_dilated(x, wx, (1, 1), "SAME", dimension_numbers=dn)
    cy = lax.conv_general_dilated(x, wy, (1, 1), "SAME", dimension_numbers=dn)
    return cx + cy


if __name__ == "__main__":
    B, C, H, W = 2, 4, 16, 16
    key = jax.random.PRNGKey(0)
    x = jax.random.normal(key, (B, C, H, W), dtype=jnp.float32)
    wx, wy = make_weights(C)

    out = edge_detection_layer(x, wx, wy)
    out = jax.block_until_ready(out)

    ref = _reference(x, wx, wy)
    assert out.shape == (B, C, H, W)
    assert jnp.allclose(out, ref, atol=1e-3, rtol=1e-3), float(jnp.max(jnp.abs(out - ref)))
    print("KERNEL_OK")
</pallas_src>

<mosaic_0001>
module attributes {stable_mosaic.version = 11 : i64} {
  func.func @kernel(%arg0: i32, %arg1: memref<1x4x256xf32, #tpu.memory_space<vmem>>, %arg2: memref<4x36xf32, #tpu.memory_space<vmem>>, %arg3: memref<1x4x256xf32, #tpu.memory_space<vmem>>) attributes {dimension_semantics = [#tpu.dimension_semantics<parallel>], iteration_bounds = array<i64: 2>, scalar_prefetch = 0 : i64, scratch_operands = 0 : i64, tpu.core_type = #tpu.core_type<tc>, window_params = [{transform_indices = @transform_0, window_bounds = array<i64: 1, 4, 256>}, {pipeline_mode = #tpu.pipeline_mode<synchronous>, transform_indices = @transform_1, window_bounds = array<i64: 4, 36>}, {transform_indices = @transform_2, window_bounds = array<i64: 1, 4, 256>}]} {
    %c0 = arith.constant 0 : index
    %c0_0 = arith.constant 0 : index
    %c0_1 = arith.constant 0 : index
    %0 = vector.load %arg1[%c0, %c0_0, %c0_1] : memref<1x4x256xf32, #tpu.memory_space<vmem>>, vector<1x4x256xf32>
    %1 = vector.shape_cast %0 : vector<1x4x256xf32> to vector<4x256xf32>
    %cst = arith.constant 0.000000e+00 : f32
    %2 = vector.broadcast %cst : f32 to vector<4x32xf32>
    %3 = tpu.concatenate %2, %1, %2 in 1 : vector<4x32xf32>, vector<4x256xf32>, vector<4x32xf32> -> vector<4x320xf32>
    %4 = tpu.iota {dimensions = array<i32: 1>} : vector<4x256xi32>
    %c16_i32 = arith.constant 16 : i32
    %c0_i32 = arith.constant 0 : i32
    %5 = arith.cmpi eq, %c16_i32, %c0_i32 : i32
    %c1_i32 = arith.constant 1 : i32
    %6 = arith.select %5, %c1_i32, %c16_i32 : i32
    %7 = vector.broadcast %6 : i32 to vector<4x256xi32>
    %8 = arith.remsi %4, %7 : vector<4x256xi32>
    %c0_i32_2 = arith.constant 0 : i32
    %9 = vector.broadcast %c0_i32_2 : i32 to vector<4x256xi32>
    %10 = arith.cmpi ne, %8, %9 : vector<4x256xi32>
    %c0_i32_3 = arith.constant 0 : i32
    %11 = vector.broadcast %c0_i32_3 : i32 to vector<4x256xi32>
    %12 = arith.cmpi slt, %8, %11 : vector<4x256xi32>
    %c0_i32_4 = arith.constant 0 : i32
    %13 = arith.cmpi slt, %6, %c0_i32_4 : i32
    %14 = vector.broadcast %13 : i1 to vector<4x256xi1>
    %15 = vector.broadcast %14 : vector<4x256xi1> to vector<4x256xi1>
    %16 = arith.xori %12, %15 : vector<4x256xi1>
    %17 = arith.andi %16, %10 : vector<4x256xi1>
    %18 = vector.broadcast %6 : i32 to vector<4x256xi32>
    %19 = arith.addi %8, %18 : vector<4x256xi32>
    %20 = arith.select %17, %19, %8 : vector<4x256xi1>, vector<4x256xi32>
    %c0_i32_5 = arith.constant 0 : i32
    %21 = vector.broadcast %c0_i32_5 : i32 to vector<4x256xi32>
    %22 = arith.cmpi ne, %20, %21 : vector<4x256xi32>
    %23 = arith.extui %22 : vector<4x256xi1> to vector<4x256xi32>
    %24 = arith.sitofp %23 : vector<4x256xi32> to vector<4x256xf32>
    %c15_i32 = arith.constant 15 : i32
    %25 = vector.broadcast %c15_i32 : i32 to vector<4x256xi32>
    %26 = arith.cmpi ne, %20, %25 : vector<4x256xi32>
    %27 = arith.extui %26 : vector<4x256xi1> to vector<4x256xi32>
    %28 = arith.sitofp %27 : vector<4x256xi32> to vector<4x256xf32>
    %29 = vector.extract_strided_slice %3 {offsets = [0, 15], sizes = [4, 256], strides = [1, 1]} : vector<4x320xf32> to vector<4x256xf32>
    %30 = arith.mulf %29, %24 : vector<4x256xf32>
    %31 = vector.extract_strided_slice %3 {offsets = [0, 16], sizes = [4, 256], strides = [1, 1]} : vector<4x320xf32> to vector<4x256xf32>
    %32 = vector.extract_strided_slice %3 {offsets = [0, 17], sizes = [4, 256], strides = [1, 1]} : vector<4x320xf32> to vector<4x256xf32>
    %33 = arith.mulf %32, %28 : vector<4x256xf32>
    %34 = vector.extract_strided_slice %3 {offsets = [0, 31], sizes = [4, 256], strides = [1, 1]} : vector<4x320xf32> to vector<4x256xf32>
    %35 = arith.mulf %34, %24 : vector<4x256xf32>
    %36 = vector.extract_strided_slice %3 {offsets = [0, 32], sizes = [4, 256], strides = [1, 1]} : vector<4x320xf32> to vector<4x256xf32>
    %37 = vector.extract_strided_slice %3 {offsets = [0, 33], sizes = [4, 256], strides = [1, 1]} : vector<4x320xf32> to vector<4x256xf32>
    %38 = arith.mulf %37, %28 : vector<4x256xf32>
    %39 = vector.extract_strided_slice %3 {offsets = [0, 47], sizes = [4, 256], strides = [1, 1]} : vector<4x320xf32> to vector<4x256xf32>
    %40 = arith.mulf %39, %24 : vector<4x256xf32>
    %41 = vector.extract_strided_slice %3 {offsets = [0, 48], sizes = [4, 256], strides = [1, 1]} : vector<4x320xf32> to vector<4x256xf32>
    %42 = vector.extract_strided_slice %3 {offsets = [0, 49], sizes = [4, 256], strides = [1, 1]} : vector<4x320xf32> to vector<4x256xf32>
    %43 = arith.mulf %42, %28 : vector<4x256xf32>
    %44 = tpu.concatenate %30, %31, %33, %35, %36, %38, %40, %41, %43 in 0 : vector<4x256xf32>, vector<4x256xf32>, vector<4x256xf32>, vector<4x256xf32>, vector<4x256xf32>, vector<4x256xf32>, vector<4x256xf32>, vector<4x256xf32>, vector<4x256xf32> -> vector<36x256xf32>
    %c0_6 = arith.constant 0 : index
    %c0_7 = arith.constant 0 : index
    %45 = vector.load %arg2[%c0_6, %c0_7] : memref<4x36xf32, #tpu.memory_space<vmem>>, vector<4x36xf32>
    %cst_8 = arith.constant dense<0.000000e+00> : vector<4x256xf32>
    %46 = tpu.matmul %45, %44, %cst_8 {dimension_numbers = #tpu.dot_dimension_numbers<[1], [0], [0], [1], [0, 0, 1, 1], [], []>} : vector<4x36xf32>, vector<36x256xf32>, vector<4x256xf32> -> vector<4x256xf32>
    %c0_9 = arith.constant 0 : index
    %c0_10 = arith.constant 0 : index
    %c0_11 = arith.constant 0 : index
    %47 = vector.load %arg3[%c0_9, %c0_10, %c0_11] : memref<1x4x256xf32, #tpu.memory_space<vmem>>, vector<1x4x256xf32>
    %48 = vector.shape_cast %47 : vector<1x4x256xf32> to vector<4x256xf32>
    %49 = vector.shape_cast %46 : vector<4x256xf32> to vector<1x4x256xf32>
    tpu.vector_store %arg3[%c0_9, %c0_10, %c0_11], %49 {strides = array<i32>} : memref<1x4x256xf32, #tpu.memory_space<vmem>>, vector<1x4x256xf32>,
    return
  }
  func.func @transform_0(%arg0: i32) -> (i32, i32, i32) {
    %c0_i32 = arith.constant 0 : i32
    %c0_i32_0 = arith.constant 0 : i32
    %c0_i32_1 = arith.constant 0 : i32
    return %arg0, %c0_i32, %c0_i32_0 : i32, i32, i32
  }
  func.func @transform_1(%arg0: i32) -> (i32, i32) {
    %c0_i32 = arith.constant 0 : i32
    %c0_i32_0 = arith.constant 0 : i32
    %c0_i32_1 = arith.constant 0 : i32
    return %c0_i32, %c0_i32_0 : i32, i32
  }
  func.func @transform_2(%arg0: i32) -> (i32, i32, i32) {
    %c0_i32 = arith.constant 0 : i32
    %c0_i32_0 = arith.constant 0 : i32
    %c0_i32_1 = arith.constant 0 : i32
    return %arg0, %c0_i32, %c0_i32_0 : i32, i32, i32
  }
}

</mosaic_0001>

<bundles_post_ra>
// kernel: tpu_custom_call.1
= control target key start
LH: loop header
LB: loop body
LE: loop exit
PB: predicated region body
PF: predicated region fallthrough
CT: control target
= control target key end

     0   :  { %7 = vsyncpa [#allocation3], 0  ;;  %s1240_s0 = inlined_call_operand.hbm [shape: f32[2,4,256], index: 0, kind: input, shape index: {}]   ;;  %s1241_s1 = inlined_call_operand.hbm [shape: f32[4,36], index: 1, kind: input, shape index: {}]   ;;  %s1242_s2 = inlined_call_operand.hbm [shape: f32[2,4,256], index: 2, kind: output, shape index: {}]  }
   0x1   :  { %9 = vsyncpa [#allocation3 + $0x1], 0 }
   0x2   :  { %10 = vsyncpa [#allocation6], 0 }
   0x3   :  { %11 = vsyncpa [#allocation4], 0 }
   0x4   :  { %13 = vsyncpa [#allocation4 + $0x1], 0  ;;  %s964_s9 = smov 0   ;;  %s966_s10 = smov 0  }
   0x5   :  { %s968_s11 = smov 0   ;;  %s970_s12 = smov 0  }
   0x6 LB: > { %s985_s13 = sadd.s32 4294967295, %s927_s12   ;;  %s675_s14 = sadd.s32 4294967294, %s927_s12   ;;  %s927_s12 = sphi %s970_s12, %s1265_s12   ;;  %s923_s11 = sphi %s968_s11, %s1264_s11   ;;  %s919_s10 = sphi %s966_s10, %s1263_s10   ;;  %s915_s9 = sphi %s964_s9, %s1262_s9  }
   0x7   : > { %p39_p0 = scmp.ne.s32.totalorder %s919_s10, %s915_s9  ;;  %p1243_p1 = scmp.eq.s32.totalorder %s985_s13, 0 }
   0x8   : > { %p90_p3 = scmp.eq.s32.totalorder %s675_s14, 1  ;;  %p676_p5 = scmp.ge.s32.totalorder %s927_s12, 1 }
   0x9   : > { %p994_p4 = por %p1243_p1, %p39_p0  ;;  %p97_p7 = scmp.lt.s32.totalorder %s927_s12, 3 }
   0xa   : > { %p999_p6 = por %p90_p3, %p39_p0  ;;  %s929_s18 = smov [#allocation5]  }
   0xb   : > { %s1247_s15 = scalar_select %p994_p4, 1, 0 }
   0xc   : > { %s1248_s16 = scalar_select %p999_p6, 1, 0 }
   0xd   : > { %p1004_p8 = pnand %p676_p5, %p97_p7  ;;  %s110_s19 = sshll.u32 %s929_s18, 4  ;;  %s111_s19 = int_to_ptr.vmem [resolvable:$true] %s110_s19 }
   0xe   : > { %s1012_s20 = sadd.s32 1, %s927_s12   ;;  %s26_s24 = sadd.s32 1, %s923_s11 }
   0xf   : > { %s1249_s17 = scalar_select %p1004_p8, 1, 0 }
  0x10   : > { %p708_p10 = pneg %p1004_p8  ;;  %s23_s22 = ssub.s32 %s927_s12, %s1012_s20 }
  0x11   : > { %p1022_p12 = scmp.eq.s32.totalorder %s23_s22, 0  ;;  %p33_p13 = scmp.ne.s32.totalorder %s923_s11, %s919_s10 }
  0x12   : > { %p1016_p11 = pnand %p708_p10, %p1243_p1  ;;  %s816_s25 = scalar_lea.vmem %s111_s19, 64 }
  0x13   : > { %p817_p3 = scmp.ne.s32.totalorder %s111_s19, %s816_s25  ;;  %p824_p9 = scmp.lt.s32.totalorder %s111_s19, %s111_s19 }
  0x14   : > { %p807_p0 = pneg %p1016_p11  ;;  %p825_p2 = scmp.lt.s32.totalorder %s816_s25, %s816_s25 }
  0x16   : > { %p819_p5 = pnand %p817_p3, %p807_p0  ;;  %p826_p10 = por %p825_p2, %p824_p9 }
  0x18   : > { %p820_p7 = pneg %p819_p5 }
  0x1a   : > { %p827_p1 = pnand %p826_p10, %p820_p7 }
  0x1c   : > { %830 = shalt.err (!%p827_p1)
}
  0x1d   : > { %711 = dma.hbm_to_vmem [thread:$0]  (!%p1016_p11), %s1241_s1, 64, %s111_s19, [#allocation6]  }
  0x1e   : > { %s1039_s28 = scalar_select %p1022_p12, %s923_s11, %s26_s24  }
  0x1f   : > { %p34_p1 = scmp.eq.s32.totalorder %s927_s12, 0  ;;  %p1252_p2 = scmp.eq.s32.totalorder %s985_s13, 1 }
  0x20   : > { %p721_p0 = scmp.lt.s32.totalorder %s927_s12, 2  ;;  %s121_s30 = sand.u32 1, %s923_s11  }
  0x21   : > { %p1047_p9 = por %p1252_p2, %p33_p13  ;;  %p35_p3 = por %p34_p1, %p33_p13 }
  0x22   : > { %s679_s3 = sshll.u32 %s121_s30, 3  ;;  %s698_s4 = sshll.u32 %s927_s12, 7 }
  0x23   : > { %s1253_s29 = scalar_select %p1047_p9, 1, 0 }
  0x24   : > { %s1060_s7 = scalar_lea.hbm %s1240_s0, %s698_s4  ;;  %s125_s8 = scalar_lea.vmem [#allocation2], %s679_s3 }
  0x25   : > { %s133_s14 = sshll.u32 %s125_s8, 4  ;;  %p1062_p11 = pnand %p721_p0, %p35_p3  ;;  %s134_s14 = int_to_ptr.vmem [resolvable:$true] %s133_s14 }
  0x26   : > { %s122_s19 = scalar_lea.sflag [#allocation3], %s121_s30  ;;  %s831_s21 = scalar_lea.hbm %s1060_s7, 128 }
  0x27   : > { %p832_p12 = scmp.ne.s32.totalorder %s1060_s7, %s831_s21  ;;  %p833_p13 = pneg %p1062_p11 }
  0x28   : > { %s836_s24 = scalar_lea.hbm %s1240_s0, 256  ;;  %p837_p10 = scmp.lt.s32.totalorder %s1060_s7, %s1240_s0 }
  0x29   : > { %p834_p5 = pnand %p833_p13, %p832_p12  ;;  %p838_p1 = scmp.lt.s32.totalorder %s836_s24, %s831_s21 }
  0x2b   : > { %p835_p7 = pneg %p834_p5  ;;  %p839_p2 = por %p838_p1, %p837_p10 }
  0x2d   : > { %p840_p0 = pnand %p839_p2, %p835_p7 }
  0x2f   : > { %843 = shalt.err (!%p840_p0)
}
  0x30   : > { %s844_s27 = scalar_lea.vmem %s134_s14, 128  ;;  %s930_s30 = smov [#allocation2]  }
  0x31   : > { %p845_p3 = scmp.ne.s32.totalorder %s134_s14, %s844_s27  ;;  %s849_s3 = sshll.u32 %s930_s30, 4  ;;  %s850_s3 = int_to_ptr.vmem [resolvable:$false] %s849_s3 }
  0x32   : > { %s851_s4 = scalar_lea.vmem %s850_s3, 256  ;;  %p852_p12 = scmp.lt.s32.totalorder %s134_s14, %s850_s3 }
  0x33   : > { %p847_p6 = pnand %p845_p3, %p833_p13  ;;  %p853_p5 = scmp.lt.s32.totalorder %s851_s4, %s844_s27 }
  0x35   : > { %p848_p9 = pneg %p847_p6  ;;  %p854_p4 = por %p853_p5, %p852_p12 }
  0x37   : > { %p855_p8 = pnand %p854_p4, %p848_p9 }
  0x39   : > { %858 = shalt.err (!%p855_p8)
}
  0x3a   : > { %715 = dma.hbm_to_vmem [thread:$0]  (!%p1062_p11), %s1060_s7, 128, %s134_s14, %s122_s19  }
  0x3b   : > { %p1255_p7 = scmp.ne.s32.totalorder %s1249_s17, 0 }
  0x3c   : > { %s1083_s5 = sand.u32 (!%p1255_p7), 1, %s919_s10   ;;  %p1256_p4 = scmp.ne.s32.totalorder (!%p1255_p7), %s1247_s15, 0 }
  0x3d   : > { %142 = sbr.rel (%p1255_p7) target bundleno = 698 (0x2ba), region = 28  ;;  %s683_s6 = sshll.u32 (!%p1255_p7), %s1083_s5, 3 }
  0x3e   : > { %s145_s8 = scalar_lea.sflag (!%p1255_p7), [#allocation3], %s1083_s5  ;;  %s148_s21 = scalar_lea.vmem (!%p1255_p7), [#allocation2], %s683_s6 }
  0x42   : > { %902 = dma.done.wait (%p1256_p4), %s145_s8, 128  }
  0x43   : > { %904 = vsyncadd (%p1256_p4), %s145_s8, 4294967168  ;;  %p1257_p6 = scmp.eq.s32.totalorder %s985_s13, 0 }
  0x45   : > { %906 = dma.done.wait (%p1257_p6), [#allocation6], 64   ;;  %p1258_p8 = pmov %p1257_p6 }
  0x46   : > { %v187_v0 = vlaneseq  ;;  %v931_v1 = vmov 0.0   ;;  %v173_v6 = vld [vmem:[%s148_s21] sm:$0xff]  ;;  %s932_s17 = smov 32   ;;  %s933_s15 = smov 49   ;;  %vm180_vm4 = vcmask 261120   ;;  %vm294_vm5 = vcmask 400384  }
  0x47   : > { %908 = vsyncadd (%p1258_p8), [#allocation6], 4294967232  ;;  %568 = vmatprep.mubr.f32.mxu0 %v931_v1  ;;  %176 = vrot.lane.b32.xlu0 %v173_v6, %s932_s17  ;;  %v175_v8 = vcombine.high %v173_v6, %v173_v6  ;;  %s934_s7 = smov 33   ;;  %s935_s14 = smov 47   ;;  %vm282_vm6 = vcmask 384000   ;;  %vm270_vm7 = vcmask 269312  }
  0x48   : > { %v188_v2 = vand.u32 127, %v187_v0  ;;  %s936_s18 = smov 31   ;;  %s937_s19 = smov 17   ;;  %vm246_vm8 = vcmask 138240   ;;  %vm258_vm9 = vcmask 252928   ;;  %vm418_vm10 = vcmask 769024  }
  0x49   : > { %s938_s22 = smov 15   ;;  %s939_s23 = smov 111   ;;  %vm391_vm11 = vcmask 785408   ;;  %vm403_vm12 = vcmask 777216   ;;  %vm421_vm13 = vcmask 1043456   ;;  %vm232_vm14 = vcmask 121856  }
  0x4a   : > { %v189_v3 = vadd.s32 128, %v188_v2  ;;  %v194_v4 = vand.u32 15, %v188_v2  ;;  %s940_s24 = smov 94   ;;  %s941_s25 = smov 95   ;;  %vm313_vm15 = vcmask 1039360  }
  0x4b   : > { %178 = vrot.lane.b32.xlu0 %v175_v8, %s932_s17  ;;  %s942_s26 = smov 96   ;;  %s943_s27 = smov 126  }
  0x4c   : > { %v201_v5 = vand.u32 15, %v189_v3  ;;  %vm220_vm0 = vcmp.ne.s32.totalorder %v194_v4, 15  ;;  %vm214_vm1 = vcmp.ne.s32.totalorder %v194_v4, 0  ;;  %s944_s30 = smov 112   ;;  %s945_s3 = smov 110  }
  0x4d   : > { %v688_v7 = vsel %vm220_vm0, 1.0, %v931_v1  ;;  %v686_v10 = vsel %vm214_vm1, 1.0, %v931_v1  ;;  %s946_s4 = smov 127   ;;  %s947_s8 = smov 113   ;;  %vm328_vm0 = vcmask 1031168   ;;  %vm346_vm1 = vcmask 916480  }
  0x4e   : > { %vm221_vm2 = vcmp.ne.s32.totalorder %v201_v5, 15  ;;  %vm215_vm3 = vcmp.ne.s32.totalorder %v201_v5, 0  ;;  %s699_s21 = sshll.u32 %s985_s13, 7  ;;  %s172_s17 = scalar_lea.vmem [#allocation7], %s683_s6 }
  0x4f   : > { %v689_v9 = vsel %vm221_vm2, 1.0, %v931_v1  ;;  %v687_v11 = vsel %vm215_vm3, 1.0, %v931_v1  ;;  %vm358_vm2 = vcmask 908288   ;;  %vm376_vm3 = vcmask 900096   ;;  %p1259_p11 = scmp.ne.s32.totalorder %s1253_s29, 0 }
  0x50   : > { %v774_v12 = vpack.i.bf16 %v689_v9, %v688_v7  ;;  %v784_v13 = vpack.i.bf16 %v687_v11, %v686_v10 }
  0x52   : > { %775 = vrot.lane.b32.xlu1 %v774_v12, %s933_s15  ;;  %785 = vrot.lane.b32.xlu0 %v784_v13, %s935_s14  ;;  %s595_s15 = sshll.u32 %s172_s17, 4  ;;  %s596_s15 = int_to_ptr.vmem [resolvable:$true] %s595_s15 }
  0x56   : > { %780 = vrot.lane.b32.xlu1 %v774_v12, %s934_s7  ;;  %795 = vrot.lane.b32.xlu0 %v774_v12, %s937_s19  ;;  %s581_s19 = scalar_lea.sflag [#allocation4], %s1083_s5 }
  0x5a   : > { %790 = vrot.lane.b32.xlu1 %v784_v13, %s936_s18  ;;  %800 = vrot.lane.b32.xlu0 %v784_v13, %s938_s22  ;;  %s593_s18 = scalar_lea.hbm %s1242_s2, %s699_s21  ;;  %s859_s22 = scalar_lea.vmem %s596_s15, 128 }
  0x5b   : > { %p860_p9 = scmp.ne.s32.totalorder %s596_s15, %s859_s22 }
  0x5d   : > { %p861_p13 = pnand %p860_p9, %p1259_p11 }
  0x5f   : > { %p862_p10 = pneg %p861_p13 }
  0xb9   : > { %v177_v14 = vpop.permute.xlu0 %176 }
  0xba   : > { %v1098_v15 = vsel %vm180_vm4, 0.0, %v177_v14 }
  0xbb   : > { %352 = vrot.lane.b32.xlu0 %v1098_v15, %s939_s23  ;;  %v304_v23 = vrot.slane %v1098_v15, 4 }
  0xbd   : > { %v179_v17 = vpop.permute.xlu0 %178 }
  0xbe   : > { %v1109_v27 = vsel %vm180_vm4, %v177_v14, %v179_v17  ;;  %v1112_v28 = vsel %vm180_vm4, %v179_v17, 0.0  ;;  %vm477_vm4 = vcmask 924672  }
  0xbf   : > { %v306_v38 = vrot.slane %v1112_v28, 4  ;;  %v305_v47 = vrot.slane %v1109_v27, 4 }
  0xc4   : > { %v776_v16 = vpop.permute.xlu1 %775  ;;  %v786_v20 = vpop.permute.xlu0 %785 }
  0xc5   : > { %v777_v18 = vunpack.i.l.bf16 %v776_v16  ;;  %v787_v21 = vunpack.i.l.bf16 %v786_v20  ;;  %v778_v25 = vunpack.i.h.bf16 %v776_v16  ;;  %v788_v30 = vunpack.i.h.bf16 %v786_v20 }
  0xc7   : > { %v299_v19 = vmul.f32 %v777_v18, %v1098_v15  ;;  %v287_v22 = vmul.f32 %v787_v21, %v1098_v15  ;;  %v301_v32 = vmul.f32 %v778_v25, %v1112_v28  ;;  %v295_v33 = vsel %vm294_vm5, %v777_v18, %v778_v25 }
  0xc8   : > { %v796_v24 = vpop.permute.xlu0 %795  ;;  %v781_v29 = vpop.permute.xlu1 %780  ;;  %v289_v34 = vmul.f32 %v788_v30, %v1112_v28  ;;  %v300_v35 = vmul.f32 %v295_v33, %v1109_v27  ;;  %v283_v37 = vsel %vm282_vm6, %v787_v21, %v788_v30  ;;  %vm496_vm5 = vcmask 293888  }
  0xc9   : > { %412 = vrot.lane.b32.xlu1 %v299_v19, %s940_s24  ;;  %385 = vrot.lane.b32.xlu0 %v287_v22, %s942_s26  ;;  %v797_v26 = vunpack.i.l.bf16 %v796_v24  ;;  %v782_v39 = vunpack.i.l.bf16 %v781_v29  ;;  %v798_v41 = vunpack.i.h.bf16 %v796_v24  ;;  %v288_v42 = vmul.f32 %v283_v37, %v1109_v27 }
  0xca   : > { %v783_v43 = vunpack.i.h.bf16 %v781_v29 }
  0xcb   : > { %v251_v31 = vmul.f32 %v797_v26, %v1098_v15  ;;  %v275_v44 = vmul.f32 %v782_v39, %v1098_v15  ;;  %v253_v46 = vmul.f32 %v798_v41, %v1112_v28  ;;  %v247_v53 = vsel %vm246_vm8, %v797_v26, %v798_v41 }
  0xcc   : > { %v791_v36 = vpop.permute.xlu1 %790  ;;  %v271_v48 = vsel %vm270_vm7, %v782_v39, %v783_v43  ;;  %v252_v56 = vmul.f32 %v247_v53, %v1109_v27  ;;  %v277_v57 = vmul.f32 %v783_v43, %v1112_v28  ;;  %v1140_v63 = vpop.permute.xlu0 %800 }
  0xcd   : > { %397 = vrot.lane.b32.xlu1 %v304_v23, %s941_s25  ;;  %354 = vrot.lane.b32.xlu0 %v1109_v27, %s939_s23  ;;  %v792_v40 = vunpack.i.l.bf16 %v791_v36  ;;  %v793_v49 = vunpack.i.h.bf16 %v791_v36  ;;  %v367_v51 = vrot.slane %v275_v44, 4  ;;  %v276_v52 = vmul.f32 %v271_v48, %v1109_v27 }
  0xce   : > { %v369_v60 = vrot.slane %v277_v57, 4  ;;  %v803_v30 = vunpack.i.h.bf16 %v1140_v63 }
  0xcf   : > { %v263_v45 = vmul.f32 %v792_v40, %v1098_v15  ;;  %v265_v54 = vmul.f32 %v793_v49, %v1112_v28  ;;  %v368_v55 = vrot.slane %v276_v52, 4  ;;  %v259_v59 = vsel %vm258_vm9, %v792_v40, %v793_v49 }
  0xd0   : > { %v264_v61 = vmul.f32 %v259_v59, %v1109_v27  ;;  %v239_v52 = vmul.f32 %v803_v30, %v1112_v28 }
  0xd1   : > { %356 = vrot.lane.b32.xlu1 %v1112_v28, %s939_s23  ;;  %416 = vrot.lane.b32.xlu0 %v301_v32, %s940_s24  ;;  %v337_v50 = vrot.slane %v263_v45, 4  ;;  %v339_v58 = vrot.slane %v265_v54, 4  ;;  %s948_s23 = smov [#allocation7]  }
  0xd2   : > { %v338_v62 = vrot.slane %v264_v61, 4 }
  0xd5   : > { %322 = vrot.lane.b32.xlu1 %v251_v31, %s943_s27  ;;  %389 = vrot.lane.b32.xlu0 %v289_v34, %s942_s26  ;;  %v802_v31 = vunpack.i.l.bf16 %v1140_v63 }
  0xd7   : > { %v233_v34 = vsel %vm232_vm14, %v802_v31, %v803_v30 }
  0xd8   : > { %v238_v37 = vmul.f32 %v233_v34, %v1109_v27 }
  0xd9   : > { %414 = vrot.lane.b32.xlu1 %v300_v35, %s940_s24  ;;  %401 = vrot.lane.b32.xlu0 %v306_v38, %s941_s25  ;;  %s863_s24 = sshll.u32 %s948_s23, 4  ;;  %s864_s24 = int_to_ptr.vmem [resolvable:$false] %s863_s24 }
  0xda   : > { %s865_s13 = scalar_lea.vmem %s864_s24, 256  ;;  %p866_p1 = scmp.lt.s32.totalorder %s596_s15, %s864_s24 }
  0xdb   : > { %p867_p2 = scmp.lt.s32.totalorder %s865_s13, %s859_s22 }
  0xdd   : > { %387 = vrot.lane.b32.xlu1 %v288_v42, %s942_s26  ;;  %326 = vrot.lane.b32.xlu0 %v253_v46, %s943_s27  ;;  %p868_p0 = por %p867_p2, %p866_p1 }
  0xdf   : > { %p869_p3 = pnand %p868_p0, %p862_p10 }
  0xe1   : > { %399 = vrot.lane.b32.xlu1 %v305_v47, %s941_s25  ;;  %340 = vrot.lane.b32.xlu0 %v337_v50, %s944_s30 }
  0xe5   : > { %370 = vrot.lane.b32.xlu1 %v367_v51, %s945_s3  ;;  %372 = vrot.lane.b32.xlu0 %v368_v55, %s945_s3 }
  0xe9   : > { %324 = vrot.lane.b32.xlu1 %v252_v56, %s943_s27  ;;  %344 = vrot.lane.b32.xlu0 %v339_v58, %s944_s30  ;;  %v237_v58 = vmul.f32 %v802_v31, %v1098_v15 }
  0xed   : > { %309 = vrot.lane.b32.xlu1 %v305_v47, %s946_s4  ;;  %311 = vrot.lane.b32.xlu0 %v306_v38, %s946_s4 }
  0xf1   : > { %374 = vrot.lane.b32.xlu1 %v369_v60, %s945_s3 }
  0xf5   : > { %342 = vrot.lane.b32.xlu1 %v338_v62, %s944_s30 }
  0xf9   : > { %307 = vrot.lane.b32.xlu1 %v304_v23, %s946_s4 }
 0x12d   : > { %v1142_v0 = vpop.permute.xlu0 %352 }
 0x13b   : > { %v413_v1 = vpop.permute.xlu1 %412  ;;  %v386_v3 = vpop.permute.xlu0 %385 }
 0x13f   : > { %v398_v2 = vpop.permute.xlu1 %397  ;;  %v1146_v5 = vpop.permute.xlu0 %354 }
 0x140   : > { %v359_v54 = vsel %vm358_vm2, %v1142_v0, %v1146_v5 }
 0x143   : > { %v1144_v4 = vpop.permute.xlu1 %356  ;;  %v417_v7 = vpop.permute.xlu0 %416 }
 0x144   : > { %475 = vrot.lane.b32.xlu1 %v417_v7, %s947_s8  ;;  %v360_v47 = vsel %vm358_vm2, %v1146_v5, %v1144_v4 }
 0x147   : > { %v323_v6 = vpop.permute.xlu1 %322  ;;  %v390_v9 = vpop.permute.xlu0 %389 }
 0x14b   : > { %v415_v8 = vpop.permute.xlu1 %414  ;;  %v402_v11 = vpop.permute.xlu0 %401 }
 0x14c   : > { %v420_v10 = vsel %vm418_vm10, %v415_v8, %v417_v7  ;;  %v419_v13 = vsel %vm418_vm10, %v413_v1, %v415_v8  ;;  %v433_v19 = vsel %vm421_vm13, %v390_v9, %v402_v11 }
 0x14d   : > { %473 = vrot.lane.b32.xlu0 %v420_v10, %s947_s8 }
 0x14f   : > { %v388_v12 = vpop.permute.xlu1 %387  ;;  %v327_v14 = vpop.permute.xlu0 %326 }
 0x150   : > { %v393_v17 = vsel %vm391_vm11, %v388_v12, %v390_v9  ;;  %v392_v24 = vsel %vm391_vm11, %v386_v3, %v388_v12 }
 0x151   : > { %471 = vrot.lane.b32.xlu0 %v419_v13, %s947_s8 }
 0x153   : > { %v400_v16 = vpop.permute.xlu1 %399  ;;  %v341_v22 = vpop.permute.xlu0 %340 }
 0x154   : > { %v405_v18 = vsel %vm403_vm12, %v400_v16, %v402_v11  ;;  %v404_v21 = vsel %vm403_vm12, %v398_v2, %v400_v16 }
 0x155   : > { %469 = vrot.lane.b32.xlu0 %v433_v19, %s947_s8  ;;  %v432_v20 = vsel %vm421_vm13, %v393_v17, %v405_v18  ;;  %v431_v25 = vsel %vm421_vm13, %v392_v24, %v404_v21  ;;  %v434_v19 = vld [vmem:[#allocation5] sm:$0xf] }
 0x156   : > { %467 = vrot.lane.b32.xlu1 %v432_v20, %s947_s8 }
 0x157   : > { %v371_v23 = vpop.permute.xlu1 %370  ;;  %v373_v26 = vpop.permute.xlu0 %372 }
 0x158   : > { %v377_v51 = vsel %vm376_vm3, %v371_v23, %v373_v26 }
 0x159   : > { %v428_v55 = vsel %vm421_vm13, %v359_v54, %v377_v51 }
 0x15a   : > { %465 = vrot.lane.b32.xlu1 %v431_v25, %s947_s8 }
 0x15b   : > { %v325_v29 = vpop.permute.xlu1 %324  ;;  %v345_v32 = vpop.permute.xlu0 %344 }
 0x15c   : > { %v330_v42 = vsel %vm328_vm0, %v325_v29, %v327_v14  ;;  %v427_v27 = vsel %vm421_vm13, %v327_v14, %v345_v32  ;;  %v329_v48 = vsel %vm328_vm0, %v323_v6, %v325_v29 }
 0x15f   : > { %v310_v33 = vpop.permute.xlu1 %309  ;;  %v312_v35 = vpop.permute.xlu0 %311 }
 0x160   : > { %v315_v38 = vsel %vm313_vm15, %v310_v33, %v312_v35  ;;  %v424_v56 = vsel %vm421_vm13, %v239_v52, %v312_v35 }
 0x161   : > { %v423_v40 = vsel %vm421_vm13, %v238_v37, %v315_v38 }
 0x162   : > { %449 = vrot.lane.b32.xlu0 %v423_v40, %s947_s8 }
 0x163   : > { %v375_v36 = vpop.permute.xlu1 %374 }
 0x164   : > { %v430_v39 = vsel %vm421_vm13, %v1144_v4, %v375_v36  ;;  %v378_v45 = vsel %vm376_vm3, %v373_v26, %v375_v36 }
 0x165   : > { %463 = vrot.lane.b32.xlu1 %v430_v39, %s947_s8  ;;  %v429_v49 = vsel %vm421_vm13, %v360_v47, %v378_v45 }
 0x166   : > { %457 = vrot.lane.b32.xlu0 %v427_v27, %s947_s8 }
 0x167   : > { %v343_v41 = vpop.permute.xlu1 %342 }
 0x168   : > { %v348_v43 = vsel %vm346_vm1, %v343_v41, %v345_v32  ;;  %v347_v46 = vsel %vm346_vm1, %v341_v22, %v343_v41 }
 0x169   : > { %v426_v44 = vsel %vm421_vm13, %v330_v42, %v348_v43  ;;  %v425_v50 = vsel %vm421_vm13, %v329_v48, %v347_v46 }
 0x16a   : > { %455 = vrot.lane.b32.xlu1 %v426_v44, %s947_s8  ;;  %461 = vrot.lane.b32.xlu0 %v429_v49, %s947_s8 }
 0x16b   : > { %v308_v53 = vpop.permute.xlu1 %307 }
 0x16c   : > { %v314_v57 = vsel %vm313_vm15, %v308_v53, %v310_v33 }
 0x16d   : > { %v422_v59 = vsel %vm421_vm13, %v237_v58, %v314_v57 }
 0x16e   : > { %453 = vrot.lane.b32.xlu1 %v425_v50, %s947_s8  ;;  %459 = vrot.lane.b32.xlu0 %v428_v55, %s947_s8 }
 0x172   : > { %451 = vrot.lane.b32.xlu1 %v424_v56, %s947_s8  ;;  %447 = vrot.lane.b32.xlu0 %v422_v59, %s947_s8 }
 0x1b6   : > { %v476_v28 = vpop.permute.xlu1 %475 }
 0x1bf   : > { %v474_v60 = vpop.permute.xlu0 %473 }
 0x1c0   : > { %v487_v61 = vsel %vm477_vm4, %v474_v60, %v476_v28 }
 0x1c1   : > { %690 = vmatprep.subr.msk.mxu0 %vm421_vm13, %v487_v61 }
 0x1c3   : > { %v472_v62 = vpop.permute.xlu0 %471 }
 0x1c4   : > { %v486_v63 = vsel %vm477_vm4, %v472_v62, %v474_v60 }
 0x1c5   : > { %691 = vmatpush1.msk.msra.mxu0 %vm421_vm13, %v486_v63 }
 0x1c7   : > { %v470_v0 = vpop.permute.xlu0 %469 }
 0x1c8   : > { %v468_v1 = vpop.permute.xlu1 %467 }
 0x1c9   : > { %v485_v15 = vsel %vm477_vm4, %v468_v1, %v470_v0 }
 0x1ca   : > { %528 = vmatprep.subr.mxu0 %v485_v15 }
 0x1cc   : > { %v466_v2 = vpop.permute.xlu1 %465 }
 0x1cd   : > { %v484_v3 = vsel %vm477_vm4, %v466_v2, %v468_v1 }
 0x1ce   : > { %529 = vmatpush1.msra.mxu0 %v484_v3 }
 0x1d4   : > { %v450_v5 = vpop.permute.xlu0 %449 }
 0x1d7   : > { %v464_v4 = vpop.permute.xlu1 %463 }
 0x1d8   : > { %v458_v6 = vpop.permute.xlu0 %457 }
 0x1dc   : > { %v456_v7 = vpop.permute.xlu1 %455  ;;  %v462_v8 = vpop.permute.xlu0 %461 }
 0x1dd   : > { %v483_v10 = vsel %vm477_vm4, %v462_v8, %v464_v4  ;;  %v481_v14 = vsel %vm477_vm4, %v456_v7, %v458_v6 }
 0x1de   : > { %530 = vmatprep.subr.mxu0 %v483_v10 }
 0x1e0   : > { %v454_v9 = vpop.permute.xlu1 %453  ;;  %v460_v11 = vpop.permute.xlu0 %459 }
 0x1e1   : > { %v482_v13 = vsel %vm477_vm4, %v460_v11, %v462_v8  ;;  %v480_v16 = vsel %vm477_vm4, %v454_v9, %v456_v7 }
 0x1e2   : > { %531 = vmatpush1.msra.mxu0 %v482_v13 }
 0x1e3   : > { %532 = vmatprep.subr.mxu0 %v481_v14 }
 0x1e4   : > { %v452_v12 = vpop.permute.xlu1 %451  ;;  %v448_v17 = vpop.permute.xlu0 %447  ;;  %533 = vmatpush1.msra.mxu0 %v480_v16 }
 0x1e5   : > { %v479_v18 = vsel %vm477_vm4, %v450_v5, %v452_v12  ;;  %v478_v20 = vsel %vm477_vm4, %v448_v17, %v450_v5 }
 0x1e6   : > { %534 = vmatprep.subr.mxu0 %v479_v18 }
 0x1e7   : > { %535 = vmatpush1.msra.mxu0 %v478_v20 }
 0x1e8   : > { %692 = vmatmul.mubr.msk.f32.vlgmr.msra.gmra.mxu0 %vm496_vm5, %v434_v19 }
 0x2a8   : > { %v570_v21 = vpop.f32.mrf.mxu0 }
 0x2aa   : > { %v572_v22 = vpop.f32.mrf.mxu0 }
 0x2ab   : > { %v577_v23 = vcombine.low %v570_v21, %v572_v22 }
 0x2ad   : > { %579 = vst [vmem:[%s172_s17] sm:$0xff] %v577_v23 }
 0x2ae   : > { %872 = shalt.err (!%p869_p3)
}
 0x2af   : > { %s873_s6 = scalar_lea.hbm %s593_s18, 128  ;;  %s877_s26 = scalar_lea.hbm %s1242_s2, 256 }
 0x2b0   : > { %p874_p12 = scmp.ne.s32.totalorder %s593_s18, %s873_s6  ;;  %p878_p4 = scmp.lt.s32.totalorder %s593_s18, %s1242_s2 }
 0x2b1   : > { %p879_p6 = scmp.lt.s32.totalorder %s877_s26, %s873_s6 }
 0x2b2   : > { %p875_p5 = pnand %p874_p12, %p1259_p11 }
 0x2b3   : > { %p880_p8 = por %p879_p6, %p878_p4 }
 0x2b4   : > { %p876_p7 = pneg %p875_p5 }
 0x2b6   : > { %p881_p9 = pnand %p880_p8, %p876_p7 }
 0x2b8   : > { %884 = shalt.err (!%p881_p9)
}
 0x2b9   : > { %706 = dma.vmem_to_hbm [thread:$0]  (%p1259_p11), %s596_s15, 128, %s593_s18, %s581_s19  }
 0x2ba PF: > { %s607_s3 = sand.u32 1, %s915_s9   ;;  %p1260_p13 = scmp.ne.s32.totalorder %s1248_s16, 0 }
 0x2bb   : > { %p1261_p10 = scmp.ge.s32.totalorder %s927_s12, 2  ;;  %s608_s4 = scalar_lea.sflag [#allocation4], %s607_s3 }
 0x2bd   : > { %p717_p1 = pnand %p1261_p10, %p1260_p13 }
 0x2bf   : > { %p718_p2 = pneg %p717_p1 }
 0x2c1   : > { %910 = dma.done.wait (%p718_p2), %s608_s4, 128  }
 0x2c2   : > { %912 = vsyncadd (%p718_p2), %s608_s4, 4294967168  ;;  %p16_p0 = scmp.ge.s32.totalorder %s1012_s20, 4   ;;  %s1262_s9 = smov %s919_s10 }
 0x2c3   : > { %s1263_s10 = smov %s923_s11  ;;  %s1264_s11 = smov %s1039_s28 }
 0x2c4   : > { %s1265_s12 = smov %s1012_s20  ;;  %18 = sbr.rel (!%p16_p0) target bundleno = 6 (0x6), region = 77 }
 0x2c9   :  { %613 = vsyncpa [#allocation3], 1 }
 0x2ca   :  { %615 = vsyncpa [#allocation3 + $0x1], 1 }
 0x2cb   :  { %616 = vsyncpa [#allocation6], 1 }
 0x2cc   :  { %617 = vsyncpa [#allocation4], 1 }
 0x2cd   :  { %619 = vsyncpa [#allocation4 + $0x1], 1 }

</bundles_post_ra>
